<compile_context>
chip_gen: v7x
topology: tpu7x:2x2x1
jax: 0.10.0
libtpu: 0.0.40
codegen_flags: <defaults>
</compile_context>

<pallas_src>
import jax
import jax.numpy as jnp
from jax.experimental import pallas as pl
from jax.experimental.pallas import tpu as pltpu


# --------------------------------------------------------------------------- #
# Kernel
# --------------------------------------------------------------------------- #

def _layernorm_fused(x, gamma, beta, eps=1e-5):
    """PyTorch nn.LayerNorm (biased variance, eps inside rsqrt), single-pass:
    one sweep computes mean and E[x^2]; var = E[x^2] - mean^2 (clamped >= 0)."""
    mean = jnp.mean(x, axis=-1, keepdims=True)
    mean_sq = jnp.mean(x * x, axis=-1, keepdims=True)
    var = jnp.maximum(mean_sq - mean * mean, 0.0)
    return (x - mean) * jax.lax.rsqrt(var + eps) * gamma + beta


def critic_kernel(x_ref, w1_ref, w2_ref, w3_ref, vh_ref, v2_ref, o_ref):
    """One batch tile of the critic forward.

    x_ref : (bt, Kp)  bf16   cat([state, action]) already padded to Kp lanes
    w1    : (Kp, H)   bf16   (K rows zero-padded to match x padding)
    w2    : (H, H)    bf16
    w3    : (H, H2)   bf16
    vh    : (8, H)    f32    rows 0..5 = b1, g1, be1, b2, g2, be2
    v2    : (8, H2)   f32    rows 0..2 = b3, g3, be3; row 3 = w4 (lane-major);
                              [4, 0] = b4
    o_ref : (1, 1, bt) f32   lane-dense output row for this tile
    """
    b1, g1, be1 = vh_ref[0:1, :], vh_ref[1:2, :], vh_ref[2:3, :]
    b2, g2, be2 = vh_ref[3:4, :], vh_ref[4:5, :], vh_ref[5:6, :]
    b3, g3, be3 = v2_ref[0:1, :], v2_ref[1:2, :], v2_ref[2:3, :]
    w4 = v2_ref[3:4, :]           # (1, H2) f32, lane-major head weight
    b4 = v2_ref[4:5, 0:1]         # (1, 1)  f32

    # Layer 1: bf16 matmul inputs (x already bf16), f32 accumulation; LN/ReLU
    # in f32, then store the activation in bf16 (halves spill/vst traffic).
    z = jnp.dot(x_ref[...], w1_ref[...], preferred_element_type=jnp.float32) + b1
    h = jnp.maximum(_layernorm_fused(z, g1, be1), 0.0).astype(jnp.bfloat16)

    # Layer 2
    z = jnp.dot(h, w2_ref[...], preferred_element_type=jnp.float32) + b2
    h = jnp.maximum(_layernorm_fused(z, g2, be2), 0.0).astype(jnp.bfloat16)

    # Layer 3 — keep the output in f32: it feeds the VPU head directly.
    z = jnp.dot(h, w3_ref[...], preferred_element_type=jnp.float32) + b3
    h = jnp.maximum(_layernorm_fused(z, g3, be3), 0.0)

    # Output head (H/2 -> 1): N=1 would waste the MXU; VPU multiply + XLU lane
    # reduction, then a small transpose so the store is lane-dense (1, bt).
    qcol = jnp.sum(h * w4, axis=-1, keepdims=True) + b4   # (bt, 1) f32
    o_ref[0] = qcol.T                                      # (1, bt)


# --------------------------------------------------------------------------- #
# Parameter init (orthogonal weights, zero bias — mirrors the PyTorch module)
# --------------------------------------------------------------------------- #

def _round_up(x, m):
    return (x + m - 1) // m * m


def _orthogonal(key, shape, dtype=jnp.float32):
    """Orthogonal init for an (in_features, out_features) matrix (gain=1.0).
    Matches torch.nn.init.orthogonal_ semantics up to the RNG stream."""
    rows, cols = shape
    big, small = max(rows, cols), min(rows, cols)
    a = jax.random.normal(key, (big, small), dtype=jnp.float32)
    q, r = jnp.linalg.qr(a)
    q = q * jnp.sign(jnp.diagonal(r))
    if rows < cols:
        q = q.T
    return q[:rows, :cols].astype(dtype)


def init_critic_params(key, state_dim, action_dim, hidden_dim=512):
    """Weights in bf16 (MXU inputs), vector params packed into two f32 slabs."""
    in_dim = state_dim + action_dim
    kp = _round_up(in_dim, 128)          # pad K so layer-1 is lane-aligned
    h, h2 = hidden_dim, hidden_dim // 2
    k1, k2, k3, k4 = jax.random.split(key, 4)

    w1 = jnp.zeros((kp, h), jnp.bfloat16)
    w1 = w1.at[:in_dim].set(_orthogonal(k1, (in_dim, h), jnp.bfloat16))
    w2 = _orthogonal(k2, (h, h), jnp.bfloat16)
    w3 = _orthogonal(k3, (h, h2), jnp.bfloat16)

    # (8, H) slab: rows 0..5 = b1, g1, be1, b2, g2, be2 (biases 0, gammas 1).
    vh = jnp.zeros((8, h), jnp.float32).at[1].set(1.0).at[4].set(1.0)
    # (8, H2) slab: rows 0..2 = b3, g3, be3; row 3 = head weight; [4,0] = b4.
    w4 = _orthogonal(k4, (h2, 1), jnp.float32)            # (h2, 1), kept in f32
    v2 = jnp.zeros((8, h2), jnp.float32).at[1].set(1.0).at[3].set(w4[:, 0])

    return dict(w1=w1, w2=w2, w3=w3, vh=vh, v2=v2)


# --------------------------------------------------------------------------- #
# Wrapper
# --------------------------------------------------------------------------- #

def _pick_batch_tile(batch, batch_tile):
    """Small batches -> a single tile padded to the 8-row sublane multiple.
    Large batches -> multiples of 256 (fill the MXU M dim on v6e/v7x), capped
    by `batch_tile` and sized so the grid has >= 2 steps (both v7x TCs busy;
    harmless on 1-TC v5e/v6e)."""
    b8 = _round_up(batch, 8)
    if b8 <= max(256, batch_tile // 2):
        return b8
    bt = min(batch_tile, _round_up((b8 + 1) // 2, 256))
    return _round_up(bt, 8)


def _vmem_limit_bytes(param_bytes, bt, kp, h):
    try:
        cap = int(pltpu.get_tpu_info().vmem_capacity_bytes)
    except Exception:
        cap = 64 << 20   # conservative: v7x physical VMEM
    act = bt * (4 * h) * 4 + bt * kp * 2          # in-kernel temporaries
    io = 2 * bt * kp * 2 + 2 * bt * 4             # double-buffered x/out tiles
    need = 2 * (2 * param_bytes + act + io)       # generous headroom
    return int(min(max(need, 32 << 20), (cap * 3) // 4))


def critic_forward(state, action, params, *, batch_tile=512):
    B = state.shape[0]
    kp = params["w1"].shape[0]
    h = params["w2"].shape[0]
    h2 = params["w3"].shape[1]

    # Concat once here (free in XLA), cast to bf16 for the MXU, pad K to the
    # lane-aligned width the weights were built with.
    x = jnp.concatenate([state, action], axis=1)
    in_dim = x.shape[1]
    assert in_dim <= kp, "params were built for a smaller state/action dim"
    x = x.astype(jnp.bfloat16)
    if kp != in_dim:
        x = jnp.pad(x, ((0, 0), (0, kp - in_dim)))

    bt = _pick_batch_tile(B, max(8, batch_tile))
    Bp = _round_up(B, bt)
    if Bp != B:
        x = jnp.pad(x, ((0, Bp - B), (0, 0)))
    num_tiles = Bp // bt

    param_bytes = sum(int(v.size) * v.dtype.itemsize for v in params.values())
    vmem_limit = _vmem_limit_bytes(param_bytes, bt, kp, h)

    def run(single_buffer_params):
        def const_spec(shape):
            idx = lambda i, nd=len(shape): (0,) * nd
            if single_buffer_params:
                # Resident params: fetched once, single-buffered (VMEM headroom
                # on v7x). Fallback below if this pipeline mode is unsupported.
                return pl.BlockSpec(shape, idx, pipeline_mode=pl.Buffered(1))
            return pl.BlockSpec(shape, idx)

        in_specs = [
            pl.BlockSpec((bt, kp), lambda i: (i, 0)),   # x tile (double-buffered)
            const_spec((kp, h)),
            const_spec((h, h)),
            const_spec((h, h2)),
            const_spec((8, h)),
            const_spec((8, h2)),
        ]
        out_spec = pl.BlockSpec((1, 1, bt), lambda i: (i, 0, 0))  # lane-dense

        return pl.pallas_call(
            critic_kernel,
            out_shape=jax.ShapeDtypeStruct((num_tiles, 1, bt), jnp.float32),
            grid=(num_tiles,),
            in_specs=in_specs,
            out_specs=out_spec,
            compiler_params=pltpu.CompilerParams(
                dimension_semantics=("parallel",),   # shard batch tiles across TCs
                vmem_limit_bytes=vmem_limit),
        )(x, params["w1"], params["w2"], params["w3"], params["vh"], params["v2"])

    try:
        out = run(single_buffer_params=True)
    except Exception:
        # Older Pallas without BlockSpec pipeline_mode / Buffered(1): retry with
        # default double-buffering (params are small, so this is only a minor
        # VMEM-headroom loss).
        out = run(single_buffer_params=False)

    return out.reshape(Bp, 1)[:B]


# --------------------------------------------------------------------------- #
# References for correctness checks
# --------------------------------------------------------------------------- #

def critic_forward_ref_mixed(state, action, params):
    """Plain-JAX mirror of the kernel's mixed precision (bf16 dot inputs and
    bf16 inter-layer activations, f32 accumulation, fused LN, f32 head)."""
    kp = params["w1"].shape[0]
    in_dim = state.shape[1] + action.shape[1]
    x = jnp.concatenate([state, action], axis=1).astype(jnp.bfloat16)
    x = jnp.pad(x, ((0, 0), (0, kp - in_dim)))

    vh, v2 = params["vh"], params["v2"]
    z = jnp.dot(x, params["w1"], preferred_element_type=jnp.float32) + vh[0:1]
    hh = jnp.maximum(_layernorm_fused(z, vh[1:2], vh[2:3]), 0.0).astype(jnp.bfloat16)
    z = jnp.dot(hh, params["w2"], preferred_element_type=jnp.float32) + vh[3:4]
    hh = jnp.maximum(_layernorm_fused(z, vh[4:5], vh[5:6]), 0.0).astype(jnp.bfloat16)
    z = jnp.dot(hh, params["w3"], preferred_element_type=jnp.float32) + v2[0:1]
    hh = jnp.maximum(_layernorm_fused(z, v2[1:2], v2[2:3]), 0.0)
    return jnp.sum(hh * v2[3:4], axis=-1, keepdims=True) + v2[4:5, 0:1]


def critic_forward_ref_f32(state, action, params):
    """PyTorch-faithful forward in f32 (weights cast up from storage dtype)."""
    def ln(x, g, b, eps=1e-5):
        mu = jnp.mean(x, axis=-1, keepdims=True)
        var = jnp.mean((x - mu) ** 2, axis=-1, keepdims=True)
        return (x - mu) * jax.lax.rsqrt(var + eps) * g + b

    in_dim = state.shape[1] + action.shape[1]
    vh, v2 = params["vh"], params["v2"]
    w1 = params["w1"][:in_dim].astype(jnp.float32)
    w2 = params["w2"].astype(jnp.float32)
    w3 = params["w3"].astype(jnp.float32)
    w4 = v2[3:4]                                   # (1, H2) f32
    x = jnp.concatenate([state, action], axis=1).astype(jnp.float32)
    x = jnp.maximum(ln(x @ w1 + vh[0:1], vh[1:2], vh[2:3]), 0.0)
    x = jnp.maximum(ln(x @ w2 + vh[3:4], vh[4:5], vh[5:6]), 0.0)
    x = jnp.maximum(ln(x @ w3 + v2[0:1], v2[1:2], v2[2:3]), 0.0)
    return x @ w4.T + v2[4:5, 0:1]


# --------------------------------------------------------------------------- #
# Demo / self-check
# --------------------------------------------------------------------------- #

if __name__ == "__main__":
    # Small deterministic shapes consistent with the module.
    batch, state_dim, action_dim, hidden_dim = 2, 12, 4, 32

    key = jax.random.PRNGKey(0)
    k_s, k_a, k_p = jax.random.split(key, 3)
    state = jax.random.normal(k_s, (batch, state_dim), dtype=jnp.float32)
    action = jax.random.normal(k_a, (batch, action_dim), dtype=jnp.float32)
    params = init_critic_params(k_p, state_dim, action_dim, hidden_dim)

    q = critic_forward(state, action, params)
    q = jax.block_until_ready(q)
    assert q.shape == (batch, 1)

    # Tight check vs a reference that mirrors the kernel's numerics exactly.
    q_mixed = critic_forward_ref_mixed(state, action, params)
    assert jnp.allclose(q, q_mixed, atol=5e-3, rtol=5e-3), (q, q_mixed)

    # Semantic check vs the f32 PyTorch-style forward (bf16 matmul inputs /
    # activations give ~1e-2-level differences; tolerance correspondingly loose).
    q_f32 = critic_forward_ref_f32(state, action, params)
    assert jnp.allclose(q, q_f32, atol=1e-1, rtol=1e-1), (q, q_f32)

    # Multi-tile grid check (exercises batch padding, >=2 grid steps and the
    # lane-dense (1, bt) output path).
    batch2 = 300
    k_s2, k_a2 = jax.random.split(jax.random.PRNGKey(1), 2)
    state2 = jax.random.normal(k_s2, (batch2, state_dim), dtype=jnp.float32)
    action2 = jax.random.normal(k_a2, (batch2, action_dim), dtype=jnp.float32)
    q2 = jax.block_until_ready(critic_forward(state2, action2, params, batch_tile=128))
    q2_ref = critic_forward_ref_mixed(state2, action2, params)
    assert q2.shape == (batch2, 1)
    assert jnp.allclose(q2, q2_ref, atol=5e-3, rtol=5e-3)

    print("KERNEL_OK")
</pallas_src>

<mosaic_0001>
module attributes {stable_mosaic.version = 11 : i64} {
  func.func @critic_kernel(%arg0: i32, %arg1: memref<8x128xbf16, #tpu.memory_space<vmem>>, %arg2: memref<128x32xbf16, #tpu.memory_space<vmem>>, %arg3: memref<32x32xbf16, #tpu.memory_space<vmem>>, %arg4: memref<32x16xbf16, #tpu.memory_space<vmem>>, %arg5: memref<8x32xf32, #tpu.memory_space<vmem>>, %arg6: memref<8x16xf32, #tpu.memory_space<vmem>>, %arg7: memref<1x1x8xf32, #tpu.memory_space<vmem>>) attributes {dimension_semantics = [#tpu.dimension_semantics<parallel>], iteration_bounds = array<i64: 1>, scalar_prefetch = 0 : i64, scratch_operands = 0 : i64, tpu.core_type = #tpu.core_type<tc>, window_params = [{transform_indices = @transform_0, window_bounds = array<i64: 8, 128>}, {pipeline_mode = #tpu.pipeline_mode<synchronous>, transform_indices = @transform_1, window_bounds = array<i64: 128, 32>}, {pipeline_mode = #tpu.pipeline_mode<synchronous>, transform_indices = @transform_2, window_bounds = array<i64: 32, 32>}, {pipeline_mode = #tpu.pipeline_mode<synchronous>, transform_indices = @transform_3, window_bounds = array<i64: 32, 16>}, {pipeline_mode = #tpu.pipeline_mode<synchronous>, transform_indices = @transform_4, window_bounds = array<i64: 8, 32>}, {pipeline_mode = #tpu.pipeline_mode<synchronous>, transform_indices = @transform_5, window_bounds = array<i64: 8, 16>}, {transform_indices = @transform_6, window_bounds = array<i64: 1, 1, 8>}]} {
    %c0 = arith.constant 0 : index
    %c0_0 = arith.constant 0 : index
    %0 = vector.load %arg5[%c0, %c0_0] : memref<8x32xf32, #tpu.memory_space<vmem>>, vector<1x32xf32>
    %c1 = arith.constant 1 : index
    %c0_1 = arith.constant 0 : index
    %1 = vector.load %arg5[%c1, %c0_1] : memref<8x32xf32, #tpu.memory_space<vmem>>, vector<1x32xf32>
    %c2 = arith.constant 2 : index
    %c0_2 = arith.constant 0 : index
    %2 = vector.load %arg5[%c2, %c0_2] : memref<8x32xf32, #tpu.memory_space<vmem>>, vector<1x32xf32>
    %c3 = arith.constant 3 : index
    %c0_3 = arith.constant 0 : index
    %3 = vector.load %arg5[%c3, %c0_3] : memref<8x32xf32, #tpu.memory_space<vmem>>, vector<1x32xf32>
    %c4 = arith.constant 4 : index
    %c0_4 = arith.constant 0 : index
    %4 = vector.load %arg5[%c4, %c0_4] : memref<8x32xf32, #tpu.memory_space<vmem>>, vector<1x32xf32>
    %c5 = arith.constant 5 : index
    %c0_5 = arith.constant 0 : index
    %5 = vector.load %arg5[%c5, %c0_5] : memref<8x32xf32, #tpu.memory_space<vmem>>, vector<1x32xf32>
    %c0_6 = arith.constant 0 : index
    %c0_7 = arith.constant 0 : index
    %6 = vector.load %arg6[%c0_6, %c0_7] : memref<8x16xf32, #tpu.memory_space<vmem>>, vector<1x16xf32>
    %c1_8 = arith.constant 1 : index
    %c0_9 = arith.constant 0 : index
    %7 = vector.load %arg6[%c1_8, %c0_9] : memref<8x16xf32, #tpu.memory_space<vmem>>, vector<1x16xf32>
    %c2_10 = arith.constant 2 : index
    %c0_11 = arith.constant 0 : index
    %8 = vector.load %arg6[%c2_10, %c0_11] : memref<8x16xf32, #tpu.memory_space<vmem>>, vector<1x16xf32>
    %c3_12 = arith.constant 3 : index
    %c0_13 = arith.constant 0 : index
    %9 = vector.load %arg6[%c3_12, %c0_13] : memref<8x16xf32, #tpu.memory_space<vmem>>, vector<1x16xf32>
    %c4_14 = arith.constant 4 : index
    %c0_15 = arith.constant 0 : index
    %10 = vector.load %arg6[%c4_14, %c0_15] : memref<8x16xf32, #tpu.memory_space<vmem>>, vector<1x1xf32>
    %c0_16 = arith.constant 0 : index
    %c0_17 = arith.constant 0 : index
    %11 = vector.load %arg1[%c0_16, %c0_17] : memref<8x128xbf16, #tpu.memory_space<vmem>>, vector<8x128xbf16>
    %c0_18 = arith.constant 0 : index
    %c0_19 = arith.constant 0 : index
    %12 = vector.load %arg2[%c0_18, %c0_19] : memref<128x32xbf16, #tpu.memory_space<vmem>>, vector<128x32xbf16>
    %cst = arith.constant dense<0.000000e+00> : vector<8x32xf32>
    %13 = tpu.matmul %11, %12, %cst {dimension_numbers = #tpu.dot_dimension_numbers<[1], [0], [0], [1], [0, 0, 1, 1], [], []>} : vector<8x128xbf16>, vector<128x32xbf16>, vector<8x32xf32> -> vector<8x32xf32>
    %14 = vector.broadcast %0 : vector<1x32xf32> to vector<8x32xf32>
    %15 = arith.addf %13, %14 : vector<8x32xf32>
    %cst_20 = arith.constant dense<0.000000e+00> : vector<8xf32>
    %16 = vector.multi_reduction <add>, %15, %cst_20 [1] : vector<8x32xf32> to vector<8xf32>
    %17 = vector.shape_cast %16 : vector<8xf32> to vector<8x1xf32>
    %cst_21 = arith.constant 3.200000e+01 : f32
    %18 = vector.broadcast %cst_21 : f32 to vector<8x1xf32>
    %19 = arith.divf %17, %18 : vector<8x1xf32>
    %20 = arith.mulf %15, %15 : vector<8x32xf32>
    %cst_22 = arith.constant dense<0.000000e+00> : vector<8xf32>
    %21 = vector.multi_reduction <add>, %20, %cst_22 [1] : vector<8x32xf32> to vector<8xf32>
    %22 = vector.shape_cast %21 : vector<8xf32> to vector<8x1xf32>
    %cst_23 = arith.constant 3.200000e+01 : f32
    %23 = vector.broadcast %cst_23 : f32 to vector<8x1xf32>
    %24 = arith.divf %22, %23 : vector<8x1xf32>
    %25 = arith.mulf %19, %19 : vector<8x1xf32>
    %26 = arith.subf %24, %25 : vector<8x1xf32>
    %cst_24 = arith.constant 0.000000e+00 : f32
    %27 = vector.broadcast %cst_24 : f32 to vector<8x1xf32>
    %28 = arith.maximumf %26, %27 : vector<8x1xf32>
    %29 = vector.broadcast %19 : vector<8x1xf32> to vector<8x32xf32>
    %30 = arith.subf %15, %29 : vector<8x32xf32>
    %cst_25 = arith.constant 9.99999974E-6 : f32
    %31 = vector.broadcast %cst_25 : f32 to vector<8x1xf32>
    %32 = arith.addf %28, %31 : vector<8x1xf32>
    %33 = math.rsqrt %32 : vector<8x1xf32>
    %34 = vector.broadcast %33 : vector<8x1xf32> to vector<8x32xf32>
    %35 = arith.mulf %30, %34 : vector<8x32xf32>
    %36 = vector.broadcast %1 : vector<1x32xf32> to vector<8x32xf32>
    %37 = arith.mulf %35, %36 : vector<8x32xf32>
    %38 = vector.broadcast %2 : vector<1x32xf32> to vector<8x32xf32>
    %39 = arith.addf %37, %38 : vector<8x32xf32>
    %cst_26 = arith.constant 0.000000e+00 : f32
    %40 = vector.broadcast %cst_26 : f32 to vector<8x32xf32>
    %41 = arith.maximumf %39, %40 : vector<8x32xf32>
    %42 = arith.truncf %41 : vector<8x32xf32> to vector<8x32xbf16>
    %c0_27 = arith.constant 0 : index
    %c0_28 = arith.constant 0 : index
    %43 = vector.load %arg3[%c0_27, %c0_28] : memref<32x32xbf16, #tpu.memory_space<vmem>>, vector<32x32xbf16>
    %cst_29 = arith.constant dense<0.000000e+00> : vector<8x32xf32>
    %44 = tpu.matmul %42, %43, %cst_29 {dimension_numbers = #tpu.dot_dimension_numbers<[1], [0], [0], [1], [0, 0, 1, 1], [], []>} : vector<8x32xbf16>, vector<32x32xbf16>, vector<8x32xf32> -> vector<8x32xf32>
    %45 = vector.broadcast %3 : vector<1x32xf32> to vector<8x32xf32>
    %46 = arith.addf %44, %45 : vector<8x32xf32>
    %cst_30 = arith.constant dense<0.000000e+00> : vector<8xf32>
    %47 = vector.multi_reduction <add>, %46, %cst_30 [1] : vector<8x32xf32> to vector<8xf32>
    %48 = vector.shape_cast %47 : vector<8xf32> to vector<8x1xf32>
    %cst_31 = arith.constant 3.200000e+01 : f32
    %49 = vector.broadcast %cst_31 : f32 to vector<8x1xf32>
    %50 = arith.divf %48, %49 : vector<8x1xf32>
    %51 = arith.mulf %46, %46 : vector<8x32xf32>
    %cst_32 = arith.constant dense<0.000000e+00> : vector<8xf32>
    %52 = vector.multi_reduction <add>, %51, %cst_32 [1] : vector<8x32xf32> to vector<8xf32>
    %53 = vector.shape_cast %52 : vector<8xf32> to vector<8x1xf32>
    %cst_33 = arith.constant 3.200000e+01 : f32
    %54 = vector.broadcast %cst_33 : f32 to vector<8x1xf32>
    %55 = arith.divf %53, %54 : vector<8x1xf32>
    %56 = arith.mulf %50, %50 : vector<8x1xf32>
    %57 = arith.subf %55, %56 : vector<8x1xf32>
    %cst_34 = arith.constant 0.000000e+00 : f32
    %58 = vector.broadcast %cst_34 : f32 to vector<8x1xf32>
    %59 = arith.maximumf %57, %58 : vector<8x1xf32>
    %60 = vector.broadcast %50 : vector<8x1xf32> to vector<8x32xf32>
    %61 = arith.subf %46, %60 : vector<8x32xf32>
    %cst_35 = arith.constant 9.99999974E-6 : f32
    %62 = vector.broadcast %cst_35 : f32 to vector<8x1xf32>
    %63 = arith.addf %59, %62 : vector<8x1xf32>
    %64 = math.rsqrt %63 : vector<8x1xf32>
    %65 = vector.broadcast %64 : vector<8x1xf32> to vector<8x32xf32>
    %66 = arith.mulf %61, %65 : vector<8x32xf32>
    %67 = vector.broadcast %4 : vector<1x32xf32> to vector<8x32xf32>
    %68 = arith.mulf %66, %67 : vector<8x32xf32>
    %69 = vector.broadcast %5 : vector<1x32xf32> to vector<8x32xf32>
    %70 = arith.addf %68, %69 : vector<8x32xf32>
    %cst_36 = arith.constant 0.000000e+00 : f32
    %71 = vector.broadcast %cst_36 : f32 to vector<8x32xf32>
    %72 = arith.maximumf %70, %71 : vector<8x32xf32>
    %73 = arith.truncf %72 : vector<8x32xf32> to vector<8x32xbf16>
    %c0_37 = arith.constant 0 : index
    %c0_38 = arith.constant 0 : index
    %74 = vector.load %arg4[%c0_37, %c0_38] : memref<32x16xbf16, #tpu.memory_space<vmem>>, vector<32x16xbf16>
    %cst_39 = arith.constant dense<0.000000e+00> : vector<8x16xf32>
    %75 = tpu.matmul %73, %74, %cst_39 {dimension_numbers = #tpu.dot_dimension_numbers<[1], [0], [0], [1], [0, 0, 1, 1], [], []>} : vector<8x32xbf16>, vector<32x16xbf16>, vector<8x16xf32> -> vector<8x16xf32>
    %76 = vector.broadcast %6 : vector<1x16xf32> to vector<8x16xf32>
    %77 = arith.addf %75, %76 : vector<8x16xf32>
    %cst_40 = arith.constant dense<0.000000e+00> : vector<8xf32>
    %78 = vector.multi_reduction <add>, %77, %cst_40 [1] : vector<8x16xf32> to vector<8xf32>
    %79 = vector.shape_cast %78 : vector<8xf32> to vector<8x1xf32>
    %cst_41 = arith.constant 1.600000e+01 : f32
    %80 = vector.broadcast %cst_41 : f32 to vector<8x1xf32>
    %81 = arith.divf %79, %80 : vector<8x1xf32>
    %82 = arith.mulf %77, %77 : vector<8x16xf32>
    %cst_42 = arith.constant dense<0.000000e+00> : vector<8xf32>
    %83 = vector.multi_reduction <add>, %82, %cst_42 [1] : vector<8x16xf32> to vector<8xf32>
    %84 = vector.shape_cast %83 : vector<8xf32> to vector<8x1xf32>
    %cst_43 = arith.constant 1.600000e+01 : f32
    %85 = vector.broadcast %cst_43 : f32 to vector<8x1xf32>
    %86 = arith.divf %84, %85 : vector<8x1xf32>
    %87 = arith.mulf %81, %81 : vector<8x1xf32>
    %88 = arith.subf %86, %87 : vector<8x1xf32>
    %cst_44 = arith.constant 0.000000e+00 : f32
    %89 = vector.broadcast %cst_44 : f32 to vector<8x1xf32>
    %90 = arith.maximumf %88, %89 : vector<8x1xf32>
    %91 = vector.broadcast %81 : vector<8x1xf32> to vector<8x16xf32>
    %92 = arith.subf %77, %91 : vector<8x16xf32>
    %cst_45 = arith.constant 9.99999974E-6 : f32
    %93 = vector.broadcast %cst_45 : f32 to vector<8x1xf32>
    %94 = arith.addf %90, %93 : vector<8x1xf32>
    %95 = math.rsqrt %94 : vector<8x1xf32>
    %96 = vector.broadcast %95 : vector<8x1xf32> to vector<8x16xf32>
    %97 = arith.mulf %92, %96 : vector<8x16xf32>
    %98 = vector.broadcast %7 : vector<1x16xf32> to vector<8x16xf32>
    %99 = arith.mulf %97, %98 : vector<8x16xf32>
    %100 = vector.broadcast %8 : vector<1x16xf32> to vector<8x16xf32>
    %101 = arith.addf %99, %100 : vector<8x16xf32>
    %cst_46 = arith.constant 0.000000e+00 : f32
    %102 = vector.broadcast %cst_46 : f32 to vector<8x16xf32>
    %103 = arith.maximumf %101, %102 : vector<8x16xf32>
    %104 = vector.broadcast %9 : vector<1x16xf32> to vector<8x16xf32>
    %105 = arith.mulf %103, %104 : vector<8x16xf32>
    %cst_47 = arith.constant dense<0.000000e+00> : vector<8xf32>
    %106 = vector.multi_reduction <add>, %105, %cst_47 [1] : vector<8x16xf32> to vector<8xf32>
    %107 = vector.shape_cast %106 : vector<8xf32> to vector<8x1xf32>
    %108 = vector.broadcast %10 : vector<1x1xf32> to vector<8x1xf32>
    %109 = arith.addf %107, %108 : vector<8x1xf32>
    %110 = tpu.transpose %109, [1, 0] : vector<8x1xf32> -> vector<1x8xf32>
    %c0_48 = arith.constant 0 : index
    %c0_49 = arith.constant 0 : index
    %c0_50 = arith.constant 0 : index
    %111 = vector.load %arg7[%c0_48, %c0_49, %c0_50] : memref<1x1x8xf32, #tpu.memory_space<vmem>>, vector<1x1x8xf32>
    %112 = vector.shape_cast %111 : vector<1x1x8xf32> to vector<1x8xf32>
    %113 = vector.shape_cast %110 : vector<1x8xf32> to vector<1x1x8xf32>
    tpu.vector_store %arg7[%c0_48, %c0_49, %c0_50], %113 {strides = array<i32>} : memref<1x1x8xf32, #tpu.memory_space<vmem>>, vector<1x1x8xf32>,
    return
  }
  func.func @transform_0(%arg0: i32) -> (i32, i32) {
    %c0_i32 = arith.constant 0 : i32
    %c0_i32_0 = arith.constant 0 : i32
    return %arg0, %c0_i32 : i32, i32
  }
  func.func @transform_1(%arg0: i32) -> (i32, i32) {
    %c0_i32 = arith.constant 0 : i32
    %c0_i32_0 = arith.constant 0 : i32
    %c0_i32_1 = arith.constant 0 : i32
    return %c0_i32, %c0_i32_0 : i32, i32
  }
  func.func @transform_2(%arg0: i32) -> (i32, i32) {
    %c0_i32 = arith.constant 0 : i32
    %c0_i32_0 = arith.constant 0 : i32
    %c0_i32_1 = arith.constant 0 : i32
    return %c0_i32, %c0_i32_0 : i32, i32
  }
  func.func @transform_3(%arg0: i32) -> (i32, i32) {
    %c0_i32 = arith.constant 0 : i32
    %c0_i32_0 = arith.constant 0 : i32
    %c0_i32_1 = arith.constant 0 : i32
    return %c0_i32, %c0_i32_0 : i32, i32
  }
  func.func @transform_4(%arg0: i32) -> (i32, i32) {
    %c0_i32 = arith.constant 0 : i32
    %c0_i32_0 = arith.constant 0 : i32
    %c0_i32_1 = arith.constant 0 : i32
    return %c0_i32, %c0_i32_0 : i32, i32
  }
  func.func @transform_5(%arg0: i32) -> (i32, i32) {
    %c0_i32 = arith.constant 0 : i32
    %c0_i32_0 = arith.constant 0 : i32
    %c0_i32_1 = arith.constant 0 : i32
    return %c0_i32, %c0_i32_0 : i32, i32
  }
  func.func @transform_6(%arg0: i32) -> (i32, i32, i32) {
    %c0_i32 = arith.constant 0 : i32
    %c0_i32_0 = arith.constant 0 : i32
    %c0_i32_1 = arith.constant 0 : i32
    return %arg0, %c0_i32, %c0_i32_0 : i32, i32, i32
  }
}

module attributes {stable_mosaic.version = 11 : i64} {
  func.func @critic_kernel(%arg0: i32, %arg1: memref<8x128xbf16, #tpu.memory_space<vmem>>, %arg2: memref<128x32xbf16, #tpu.memory_space<vmem>>, %arg3: memref<32x32xbf16, #tpu.memory_space<vmem>>, %arg4: memref<32x16xbf16, #tpu.memory_space<vmem>>, %arg5: memref<8x32xf32, #tpu.memory_space<vmem>>, %arg6: memref<8x16xf32, #tpu.memory_space<vmem>>, %arg7: memref<1x1x8xf32, #tpu.memory_space<vmem>>) attributes {dimension_semantics = [#tpu.dimension_semantics<parallel>], iteration_bounds = array<i64: 1>, scalar_prefetch = 0 : i64, scratch_operands = 0 : i64, tpu.core_type = #tpu.core_type<tc>, window_params = [{transform_indices = @transform_0, window_bounds = array<i64: 8, 128>}, {pipeline_mode = #tpu.pipeline_mode<synchronous>, transform_indices = @transform_1, window_bounds = array<i64: 128, 32>}, {pipeline_mode = #tpu.pipeline_mode<synchronous>, transform_indices = @transform_2, window_bounds = array<i64: 32, 32>}, {pipeline_mode = #tpu.pipeline_mode<synchronous>, transform_indices = @transform_3, window_bounds = array<i64: 32, 16>}, {pipeline_mode = #tpu.pipeline_mode<synchronous>, transform_indices = @transform_4, window_bounds = array<i64: 8, 32>}, {pipeline_mode = #tpu.pipeline_mode<synchronous>, transform_indices = @transform_5, window_bounds = array<i64: 8, 16>}, {transform_indices = @transform_6, window_bounds = array<i64: 1, 1, 8>}]} {
    %c0 = arith.constant 0 : index
    %c0_0 = arith.constant 0 : index
    %0 = vector.load %arg5[%c0, %c0_0] : memref<8x32xf32, #tpu.memory_space<vmem>>, vector<1x32xf32>
    %c1 = arith.constant 1 : index
    %c0_1 = arith.constant 0 : index
    %1 = vector.load %arg5[%c1, %c0_1] : memref<8x32xf32, #tpu.memory_space<vmem>>, vector<1x32xf32>
    %c2 = arith.constant 2 : index
    %c0_2 = arith.constant 0 : index
    %2 = vector.load %arg5[%c2, %c0_2] : memref<8x32xf32, #tpu.memory_space<vmem>>, vector<1x32xf32>
    %c3 = arith.constant 3 : index
    %c0_3 = arith.constant 0 : index
    %3 = vector.load %arg5[%c3, %c0_3] : memref<8x32xf32, #tpu.memory_space<vmem>>, vector<1x32xf32>
    %c4 = arith.constant 4 : index
    %c0_4 = arith.constant 0 : index
    %4 = vector.load %arg5[%c4, %c0_4] : memref<8x32xf32, #tpu.memory_space<vmem>>, vector<1x32xf32>
    %c5 = arith.constant 5 : index
    %c0_5 = arith.constant 0 : index
    %5 = vector.load %arg5[%c5, %c0_5] : memref<8x32xf32, #tpu.memory_space<vmem>>, vector<1x32xf32>
    %c0_6 = arith.constant 0 : index
    %c0_7 = arith.constant 0 : index
    %6 = vector.load %arg6[%c0_6, %c0_7] : memref<8x16xf32, #tpu.memory_space<vmem>>, vector<1x16xf32>
    %c1_8 = arith.constant 1 : index
    %c0_9 = arith.constant 0 : index
    %7 = vector.load %arg6[%c1_8, %c0_9] : memref<8x16xf32, #tpu.memory_space<vmem>>, vector<1x16xf32>
    %c2_10 = arith.constant 2 : index
    %c0_11 = arith.constant 0 : index
    %8 = vector.load %arg6[%c2_10, %c0_11] : memref<8x16xf32, #tpu.memory_space<vmem>>, vector<1x16xf32>
    %c3_12 = arith.constant 3 : index
    %c0_13 = arith.constant 0 : index
    %9 = vector.load %arg6[%c3_12, %c0_13] : memref<8x16xf32, #tpu.memory_space<vmem>>, vector<1x16xf32>
    %c4_14 = arith.constant 4 : index
    %c0_15 = arith.constant 0 : index
    %10 = vector.load %arg6[%c4_14, %c0_15] : memref<8x16xf32, #tpu.memory_space<vmem>>, vector<1x1xf32>
    %c0_16 = arith.constant 0 : index
    %c0_17 = arith.constant 0 : index
    %11 = vector.load %arg1[%c0_16, %c0_17] : memref<8x128xbf16, #tpu.memory_space<vmem>>, vector<8x128xbf16>
    %c0_18 = arith.constant 0 : index
    %c0_19 = arith.constant 0 : index
    %12 = vector.load %arg2[%c0_18, %c0_19] : memref<128x32xbf16, #tpu.memory_space<vmem>>, vector<128x32xbf16>
    %cst = arith.constant dense<0.000000e+00> : vector<8x32xf32>
    %13 = tpu.matmul %11, %12, %cst {dimension_numbers = #tpu.dot_dimension_numbers<[1], [0], [0], [1], [0, 0, 1, 1], [], []>} : vector<8x128xbf16>, vector<128x32xbf16>, vector<8x32xf32> -> vector<8x32xf32>
    %14 = vector.broadcast %0 : vector<1x32xf32> to vector<8x32xf32>
    %15 = arith.addf %13, %14 : vector<8x32xf32>
    %cst_20 = arith.constant dense<0.000000e+00> : vector<8xf32>
    %16 = vector.multi_reduction <add>, %15, %cst_20 [1] : vector<8x32xf32> to vector<8xf32>
    %17 = vector.shape_cast %16 : vector<8xf32> to vector<8x1xf32>
    %cst_21 = arith.constant 3.200000e+01 : f32
    %18 = vector.broadcast %cst_21 : f32 to vector<8x1xf32>
    %19 = arith.divf %17, %18 : vector<8x1xf32>
    %20 = arith.mulf %15, %15 : vector<8x32xf32>
    %cst_22 = arith.constant dense<0.000000e+00> : vector<8xf32>
    %21 = vector.multi_reduction <add>, %20, %cst_22 [1] : vector<8x32xf32> to vector<8xf32>
    %22 = vector.shape_cast %21 : vector<8xf32> to vector<8x1xf32>
    %cst_23 = arith.constant 3.200000e+01 : f32
    %23 = vector.broadcast %cst_23 : f32 to vector<8x1xf32>
    %24 = arith.divf %22, %23 : vector<8x1xf32>
    %25 = arith.mulf %19, %19 : vector<8x1xf32>
    %26 = arith.subf %24, %25 : vector<8x1xf32>
    %cst_24 = arith.constant 0.000000e+00 : f32
    %27 = vector.broadcast %cst_24 : f32 to vector<8x1xf32>
    %28 = arith.maximumf %26, %27 : vector<8x1xf32>
    %29 = vector.broadcast %19 : vector<8x1xf32> to vector<8x32xf32>
    %30 = arith.subf %15, %29 : vector<8x32xf32>
    %cst_25 = arith.constant 9.99999974E-6 : f32
    %31 = vector.broadcast %cst_25 : f32 to vector<8x1xf32>
    %32 = arith.addf %28, %31 : vector<8x1xf32>
    %33 = math.rsqrt %32 : vector<8x1xf32>
    %34 = vector.broadcast %33 : vector<8x1xf32> to vector<8x32xf32>
    %35 = arith.mulf %30, %34 : vector<8x32xf32>
    %36 = vector.broadcast %1 : vector<1x32xf32> to vector<8x32xf32>
    %37 = arith.mulf %35, %36 : vector<8x32xf32>
    %38 = vector.broadcast %2 : vector<1x32xf32> to vector<8x32xf32>
    %39 = arith.addf %37, %38 : vector<8x32xf32>
    %cst_26 = arith.constant 0.000000e+00 : f32
    %40 = vector.broadcast %cst_26 : f32 to vector<8x32xf32>
    %41 = arith.maximumf %39, %40 : vector<8x32xf32>
    %42 = arith.truncf %41 : vector<8x32xf32> to vector<8x32xbf16>
    %c0_27 = arith.constant 0 : index
    %c0_28 = arith.constant 0 : index
    %43 = vector.load %arg3[%c0_27, %c0_28] : memref<32x32xbf16, #tpu.memory_space<vmem>>, vector<32x32xbf16>
    %cst_29 = arith.constant dense<0.000000e+00> : vector<8x32xf32>
    %44 = tpu.matmul %42, %43, %cst_29 {dimension_numbers = #tpu.dot_dimension_numbers<[1], [0], [0], [1], [0, 0, 1, 1], [], []>} : vector<8x32xbf16>, vector<32x32xbf16>, vector<8x32xf32> -> vector<8x32xf32>
    %45 = vector.broadcast %3 : vector<1x32xf32> to vector<8x32xf32>
    %46 = arith.addf %44, %45 : vector<8x32xf32>
    %cst_30 = arith.constant dense<0.000000e+00> : vector<8xf32>
    %47 = vector.multi_reduction <add>, %46, %cst_30 [1] : vector<8x32xf32> to vector<8xf32>
    %48 = vector.shape_cast %47 : vector<8xf32> to vector<8x1xf32>
    %cst_31 = arith.constant 3.200000e+01 : f32
    %49 = vector.broadcast %cst_31 : f32 to vector<8x1xf32>
    %50 = arith.divf %48, %49 : vector<8x1xf32>
    %51 = arith.mulf %46, %46 : vector<8x32xf32>
    %cst_32 = arith.constant dense<0.000000e+00> : vector<8xf32>
    %52 = vector.multi_reduction <add>, %51, %cst_32 [1] : vector<8x32xf32> to vector<8xf32>
    %53 = vector.shape_cast %52 : vector<8xf32> to vector<8x1xf32>
    %cst_33 = arith.constant 3.200000e+01 : f32
    %54 = vector.broadcast %cst_33 : f32 to vector<8x1xf32>
    %55 = arith.divf %53, %54 : vector<8x1xf32>
    %56 = arith.mulf %50, %50 : vector<8x1xf32>
    %57 = arith.subf %55, %56 : vector<8x1xf32>
    %cst_34 = arith.constant 0.000000e+00 : f32
    %58 = vector.broadcast %cst_34 : f32 to vector<8x1xf32>
    %59 = arith.maximumf %57, %58 : vector<8x1xf32>
    %60 = vector.broadcast %50 : vector<8x1xf32> to vector<8x32xf32>
    %61 = arith.subf %46, %60 : vector<8x32xf32>
    %cst_35 = arith.constant 9.99999974E-6 : f32
    %62 = vector.broadcast %cst_35 : f32 to vector<8x1xf32>
    %63 = arith.addf %59, %62 : vector<8x1xf32>
    %64 = math.rsqrt %63 : vector<8x1xf32>
    %65 = vector.broadcast %64 : vector<8x1xf32> to vector<8x32xf32>
    %66 = arith.mulf %61, %65 : vector<8x32xf32>
    %67 = vector.broadcast %4 : vector<1x32xf32> to vector<8x32xf32>
    %68 = arith.mulf %66, %67 : vector<8x32xf32>
    %69 = vector.broadcast %5 : vector<1x32xf32> to vector<8x32xf32>
    %70 = arith.addf %68, %69 : vector<8x32xf32>
    %cst_36 = arith.constant 0.000000e+00 : f32
    %71 = vector.broadcast %cst_36 : f32 to vector<8x32xf32>
    %72 = arith.maximumf %70, %71 : vector<8x32xf32>
    %73 = arith.truncf %72 : vector<8x32xf32> to vector<8x32xbf16>
    %c0_37 = arith.constant 0 : index
    %c0_38 = arith.constant 0 : index
    %74 = vector.load %arg4[%c0_37, %c0_38] : memref<32x16xbf16, #tpu.memory_space<vmem>>, vector<32x16xbf16>
    %cst_39 = arith.constant dense<0.000000e+00> : vector<8x16xf32>
    %75 = tpu.matmul %73, %74, %cst_39 {dimension_numbers = #tpu.dot_dimension_numbers<[1], [0], [0], [1], [0, 0, 1, 1], [], []>} : vector<8x32xbf16>, vector<32x16xbf16>, vector<8x16xf32> -> vector<8x16xf32>
    %76 = vector.broadcast %6 : vector<1x16xf32> to vector<8x16xf32>
    %77 = arith.addf %75, %76 : vector<8x16xf32>
    %cst_40 = arith.constant dense<0.000000e+00> : vector<8xf32>
    %78 = vector.multi_reduction <add>, %77, %cst_40 [1] : vector<8x16xf32> to vector<8xf32>
    %79 = vector.shape_cast %78 : vector<8xf32> to vector<8x1xf32>
    %cst_41 = arith.constant 1.600000e+01 : f32
    %80 = vector.broadcast %cst_41 : f32 to vector<8x1xf32>
    %81 = arith.divf %79, %80 : vector<8x1xf32>
    %82 = arith.mulf %77, %77 : vector<8x16xf32>
    %cst_42 = arith.constant dense<0.000000e+00> : vector<8xf32>
    %83 = vector.multi_reduction <add>, %82, %cst_42 [1] : vector<8x16xf32> to vector<8xf32>
    %84 = vector.shape_cast %83 : vector<8xf32> to vector<8x1xf32>
    %cst_43 = arith.constant 1.600000e+01 : f32
    %85 = vector.broadcast %cst_43 : f32 to vector<8x1xf32>
    %86 = arith.divf %84, %85 : vector<8x1xf32>
    %87 = arith.mulf %81, %81 : vector<8x1xf32>
    %88 = arith.subf %86, %87 : vector<8x1xf32>
    %cst_44 = arith.constant 0.000000e+00 : f32
    %89 = vector.broadcast %cst_44 : f32 to vector<8x1xf32>
    %90 = arith.maximumf %88, %89 : vector<8x1xf32>
    %91 = vector.broadcast %81 : vector<8x1xf32> to vector<8x16xf32>
    %92 = arith.subf %77, %91 : vector<8x16xf32>
    %cst_45 = arith.constant 9.99999974E-6 : f32
    %93 = vector.broadcast %cst_45 : f32 to vector<8x1xf32>
    %94 = arith.addf %90, %93 : vector<8x1xf32>
    %95 = math.rsqrt %94 : vector<8x1xf32>
    %96 = vector.broadcast %95 : vector<8x1xf32> to vector<8x16xf32>
    %97 = arith.mulf %92, %96 : vector<8x16xf32>
    %98 = vector.broadcast %7 : vector<1x16xf32> to vector<8x16xf32>
    %99 = arith.mulf %97, %98 : vector<8x16xf32>
    %100 = vector.broadcast %8 : vector<1x16xf32> to vector<8x16xf32>
    %101 = arith.addf %99, %100 : vector<8x16xf32>
    %cst_46 = arith.constant 0.000000e+00 : f32
    %102 = vector.broadcast %cst_46 : f32 to vector<8x16xf32>
    %103 = arith.maximumf %101, %102 : vector<8x16xf32>
    %104 = vector.broadcast %9 : vector<1x16xf32> to vector<8x16xf32>
    %105 = arith.mulf %103, %104 : vector<8x16xf32>
    %cst_47 = arith.constant dense<0.000000e+00> : vector<8xf32>
    %106 = vector.multi_reduction <add>, %105, %cst_47 [1] : vector<8x16xf32> to vector<8xf32>
    %107 = vector.shape_cast %106 : vector<8xf32> to vector<8x1xf32>
    %108 = vector.broadcast %10 : vector<1x1xf32> to vector<8x1xf32>
    %109 = arith.addf %107, %108 : vector<8x1xf32>
    %110 = tpu.transpose %109, [1, 0] : vector<8x1xf32> -> vector<1x8xf32>
    %c0_48 = arith.constant 0 : index
    %c0_49 = arith.constant 0 : index
    %c0_50 = arith.constant 0 : index
    %111 = vector.load %arg7[%c0_48, %c0_49, %c0_50] : memref<1x1x8xf32, #tpu.memory_space<vmem>>, vector<1x1x8xf32>
    %112 = vector.shape_cast %111 : vector<1x1x8xf32> to vector<1x8xf32>
    %113 = vector.shape_cast %110 : vector<1x8xf32> to vector<1x1x8xf32>
    tpu.vector_store %arg7[%c0_48, %c0_49, %c0_50], %113 {strides = array<i32>} : memref<1x1x8xf32, #tpu.memory_space<vmem>>, vector<1x1x8xf32>,
    return
  }
  func.func @transform_0(%arg0: i32) -> (i32, i32) {
    %c0_i32 = arith.constant 0 : i32
    %c0_i32_0 = arith.constant 0 : i32
    return %arg0, %c0_i32 : i32, i32
  }
  func.func @transform_1(%arg0: i32) -> (i32, i32) {
    %c0_i32 = arith.constant 0 : i32
    %c0_i32_0 = arith.constant 0 : i32
    %c0_i32_1 = arith.constant 0 : i32
    return %c0_i32, %c0_i32_0 : i32, i32
  }
  func.func @transform_2(%arg0: i32) -> (i32, i32) {
    %c0_i32 = arith.constant 0 : i32
    %c0_i32_0 = arith.constant 0 : i32
    %c0_i32_1 = arith.constant 0 : i32
    return %c0_i32, %c0_i32_0 : i32, i32
  }
  func.func @transform_3(%arg0: i32) -> (i32, i32) {
    %c0_i32 = arith.constant 0 : i32
    %c0_i32_0 = arith.constant 0 : i32
    %c0_i32_1 = arith.constant 0 : i32
    return %c0_i32, %c0_i32_0 : i32, i32
  }
  func.func @transform_4(%arg0: i32) -> (i32, i32) {
    %c0_i32 = arith.constant 0 : i32
    %c0_i32_0 = arith.constant 0 : i32
    %c0_i32_1 = arith.constant 0 : i32
    return %c0_i32, %c0_i32_0 : i32, i32
  }
  func.func @transform_5(%arg0: i32) -> (i32, i32) {
    %c0_i32 = arith.constant 0 : i32
    %c0_i32_0 = arith.constant 0 : i32
    %c0_i32_1 = arith.constant 0 : i32
    return %c0_i32, %c0_i32_0 : i32, i32
  }
  func.func @transform_6(%arg0: i32) -> (i32, i32, i32) {
    %c0_i32 = arith.constant 0 : i32
    %c0_i32_0 = arith.constant 0 : i32
    %c0_i32_1 = arith.constant 0 : i32
    return %arg0, %c0_i32, %c0_i32_0 : i32, i32, i32
  }
}

</mosaic_0001>

<bundles_post_ra>
// kernel: tpu_custom_call.1
= control target key start
LH: loop header
LB: loop body
LE: loop exit
PB: predicated region body
PF: predicated region fallthrough
CT: control target
= control target key end

     0   :  { %v540_v1 = vmov 0.0   ;;  %vm541_vm0 = vmmov 0   ;;  %s689_s0 = inlined_call_operand.vmem [shape: bf16[8,128], index: 0, kind: input, shape index: {}]   ;;  %s690_s1 = inlined_call_operand.vmem [shape: bf16[128,32], index: 1, kind: input, shape index: {}]   ;;  %s691_s2 = inlined_call_operand.vmem [shape: bf16[32,32], index: 2, kind: input, shape index: {}]   ;;  %s692_s3 = inlined_call_operand.vmem [shape: bf16[32,16], index: 3, kind: input, shape index: {}]   ;;  %s693_s4 = inlined_call_operand.vmem [shape: f32[8,32], index: 4, kind: input, shape index: {}]   ;;  %s694_s5 = inlined_call_operand.vmem [shape: f32[8,16], index: 5, kind: input, shape index: {}]   ;;  %s695_s6 = inlined_call_operand.hbm [shape: f32[1,1,8], index: 6, kind: output, shape index: {}]  }
   0x1   :  { %v498_v0 = vld [vmem:[%s690_s1] sm:$0xff]   ;;  %459 = vmatprep.subr.bf16.mxu0 %v540_v1  ;;  %479 = vmatprep.subr.bf16.mxu1 %v540_v1  ;;  %v499_v2 = vld [vmem:[%s690_s1 + $0x8] sm:$0xff]   ;;  %v500_v3 = vld [vmem:[%s690_s1 + $0x10] sm:$0xff]  }
   0x2   :  { %460 = vmatpush3.bf16.msra.mxu0 %v498_v0  ;;  %475 = vmatprep.mubr.msk.bf16.mxu0 %vm541_vm0, %v540_v1  ;;  %v501_v4 = vld [vmem:[%s690_s1 + $0x18] sm:$0xff]  }
   0x3   :  { %461 = vmatprep.subr.bf16.mxu0 %v540_v1  ;;  %483 = vmatprep.mubr.msk.bf16.mxu1 %vm541_vm0, %v540_v1 }
   0x6   :  { %462 = vmatpush3.bf16.msra.mxu0 %v499_v2 }
   0x7   :  { %463 = vmatprep.subr.bf16.mxu0 %v540_v1 }
   0xa   :  { %464 = vmatpush3.bf16.msra.mxu0 %v500_v3 }
   0xb   :  { %465 = vmatprep.subr.bf16.mxu0 %v540_v1 }
   0xc   :  { %11 = vsyncpa [#allocation3], 0  ;;  %v502_v5 = vld [vmem:[%s690_s1 + $0x20] sm:$0xff]   ;;  %v503_v6 = vld [vmem:[%s690_s1 + $0x28] sm:$0xff]   ;;  %vm145_vm1 = vcmask 261120   ;;  %vm329_vm2 = vcmask 130048  }
   0xd   :  { %v504_v7 = vld [vmem:[%s690_s1 + $0x30] sm:$0xff]   ;;  %v505_v8 = vld [vmem:[%s690_s1 + $0x38] sm:$0xff]   ;;  %v36_v9 = vld [vmem:[%s689_s0] sm:$0xf]  ;;  %s542_s16 = smov [#allocation2]   ;;  %vm403_vm3 = vcmask 57344  }
   0xe   :  { %466 = vmatpush3.bf16.msra.mxu0 %v501_v4  ;;  %v419_v10 = vld [vmem:[%s693_s4] ss:$0 sm:$0xff]  ;;  %v507_v20 = vld [vmem:[%s691_s2 + $0x8] sm:$0xff]   ;;  %v428_v31 = vld [vmem:[%s693_s4 + $0x1] ss:$0 sm:$0xff]  ;;  %s411_s1 = sshll.u32 %s542_s16, 4  ;;  %s412_s1 = int_to_ptr.vmem [resolvable:$true] %s411_s1 }
   0xf   :  { %467 = vmatprep.subr.bf16.mxu0 %v540_v1  ;;  %v506_v19 = vld [vmem:[%s691_s2] sm:$0xff]   ;;  %v509_v48 = vld [vmem:[%s692_s3 + $0x8] sm:$0xff]   ;;  %s516_s0 = scalar_lea.vmem %s412_s1, 16  ;;  %s520_s17 = scalar_lea.vmem %s412_s1, 32 }
  0x10   :  { %480 = vmatpush3.bf16.msra.mxu1 %v506_v19  ;;  %v429_v33 = vld [vmem:[%s693_s4 + $0x2] ss:$0 sm:$0xff]  ;;  %v430_v38 = vld [vmem:[%s693_s4 + $0x3] ss:$0 sm:$0xff]  ;;  %v434_v59 = vld [vmem:[%s693_s4 + $0x4] ss:$0 sm:$0xff]  ;;  %p517_p0 = scmp.ne.s32.totalorder %s412_s1, %s516_s0  ;;  %p521_p1 = scmp.lt.s32.totalorder %s412_s1, %s412_s1 }
  0x11   :  { %481 = vmatprep.subr.bf16.mxu1 %v540_v1  ;;  %v508_v47 = vld [vmem:[%s692_s3] sm:$0xff]   ;;  %p522_p2 = scmp.lt.s32.totalorder %s520_s17, %s516_s0 }
  0x12   :  { %468 = vmatpush3.bf16.msra.mxu0 %v502_v5  ;;  %v435_v61 = vld [vmem:[%s693_s4 + $0x5] ss:$0 sm:$0xff]  ;;  %v436_v2 = vld [vmem:[%s694_s5] ss:$0 sm:$0xff] }
  0x13   :  { %469 = vmatprep.subr.bf16.mxu0 %v540_v1  ;;  %p523_p3 = por %p522_p2, %p521_p1 }
  0x14   :  { %482 = vmatpush3.bf16.msra.mxu1 %v507_v20 }
  0x15   :  { %487 = vmatprep.subr.bf16.mxu1 %v540_v1  ;;  %p524_p4 = pnand %p523_p3, %p517_p0 }
  0x16   :  { %470 = vmatpush3.bf16.msra.mxu0 %v503_v6 }
  0x17   :  { %471 = vmatprep.subr.bf16.mxu0 %v540_v1 }
  0x1a   :  { %472 = vmatpush3.bf16.msra.mxu0 %v504_v7 }
  0x1b   :  { %473 = vmatprep.subr.bf16.mxu0 %v540_v1 }
  0x1e   :  { %474 = vmatpush3.bf16.msra.mxu0 %v505_v8 }
  0x21   :  { %476 = vmatmul.mubr.bf16.vlgmr.msra.gmra.mrb[0].mxu0 %v36_v9 }
  0xf4   :  { %v139_v11 = vpop.f32.mrb[0].mxu0 }
  0xf5   :  { %v140_v12 = vadd.f32 %v419_v10, %v139_v11  ;;  %v477_v13 = vpop.f32.mrb[1].mxu0 }
  0xf6   :  { %v142_v14 = vpop.f32.mrb[2].mxu0 }
  0xf7   :  { %v478_v15 = vpop.f32.mrb[3].mxu0  ;;  %v146_v16 = vsel %vm145_vm1, %v140_v12, 0.0  ;;  %v151_v17 = vmul.f32 %v140_v12, %v140_v12 }
  0xf8   :  { %147 = vadd.xlane.f32.xlu0 %v146_v16 }
  0xf9   :  { %v152_v18 = vsel %vm145_vm1, %v151_v17, 0.0 }
  0xfc   :  { %153 = vadd.xlane.f32.xlu0 %v152_v18 }
 0x185   :  { %v148_v21 = vpop.xlane.xlu0 %147 }
 0x186   :  { %v150_v22 = vmul.f32 0.03125, %v148_v21  ;;  %v440_v21 = vld [vmem:[%s694_s5 + $0x1] ss:$0 sm:$0xff] }
 0x188   :  { %v156_v24 = vmul.f32 %v150_v22, %v150_v22  ;;  %v159_v29 = vsub.f32 %v140_v12, %v150_v22 }
 0x189   :  { %v154_v23 = vpop.xlane.xlu0 %153 }
 0x18a   :  { %v155_v25 = vmul.f32 0.03125, %v154_v23  ;;  %v441_v23 = vld [vmem:[%s694_s5 + $0x2] ss:$0 sm:$0xff] }
 0x18c   :  { %v157_v26 = vsub.f32 %v155_v25, %v156_v24 }
 0x18e   :  { %v158_v27 = vmax.f32 %v157_v26, 0.0  ;;  %v442_v26 = vld [vmem:[%s694_s5 + $0x3] ss:$0 sm:$0xff] }
 0x190   :  { %v160_v28 = vadd.f32 1e-05, %v158_v27 }
 0x192   :  { %510 = vrsqrt.f32 %v160_v28 }
 0x19c   :  { %v511_v30 = vpop.eup %510 }
 0x19d   :  { %v162_v32 = vmul.f32 %v511_v30, %v159_v29  ;;  %v443_v30 = vld [vmem:[%s694_s5 + $0x4] ss:$0 sm:$0xff] }
 0x19f   :  { %v167_v34 = vmul.f32 %v428_v31, %v162_v32 }
 0x1a1   :  { %v172_v35 = vadd.f32 %v429_v33, %v167_v34 }
 0x1a3   :  { %v173_v36 = vmax.f32 %v172_v35, 0.0 }
 0x1a5   :  { %v174_v37 = vpack.c.bf16 %v173_v36, %v173_v36 }
 0x1a7   :  { %484 = vmatmul.mubr.msk.bf16.vlgmr.msra.gmra.mrb[0].mxu1 %vm145_vm1, %v174_v37 }
 0x1a8   :  { %491 = vmatprep.mubr.msk.bf16.mxu1 %vm541_vm0, %v540_v1  ;;  %488 = vmatpush3.bf16.msra.mxu1 %v508_v47 }
 0x1a9   :  { %489 = vmatprep.subr.bf16.mxu1 %v540_v1 }
 0x1ac   :  { %490 = vmatpush3.bf16.msra.mxu1 %v509_v48 }
 0x27a   :  { %v232_v39 = vpop.f32.mrb[0].mxu1 }
 0x27b   :  { %v233_v40 = vadd.f32 %v430_v38, %v232_v39  ;;  %v485_v41 = vpop.f32.mrb[1].mxu1 }
 0x27c   :  { %v235_v42 = vpop.f32.mrb[2].mxu1 }
 0x27d   :  { %v486_v43 = vpop.f32.mrb[3].mxu1  ;;  %v238_v44 = vsel %vm145_vm1, %v233_v40, 0.0  ;;  %v242_v45 = vmul.f32 %v233_v40, %v233_v40 }
 0x27e   :  { %239 = vadd.xlane.f32.xlu1 %v238_v44 }
 0x27f   :  { %v243_v46 = vsel %vm145_vm1, %v242_v45, 0.0 }
 0x282   :  { %244 = vadd.xlane.f32.xlu1 %v243_v46 }
 0x30b   :  { %v240_v49 = vpop.xlane.xlu1 %239 }
 0x30c   :  { %v241_v50 = vmul.f32 0.03125, %v240_v49 }
 0x30e   :  { %v247_v52 = vmul.f32 %v241_v50, %v241_v50  ;;  %v250_v57 = vsub.f32 %v233_v40, %v241_v50 }
 0x30f   :  { %v245_v51 = vpop.xlane.xlu1 %244 }
 0x310   :  { %v246_v53 = vmul.f32 0.03125, %v245_v51 }
 0x312   :  { %v248_v54 = vsub.f32 %v246_v53, %v247_v52 }
 0x314   :  { %v249_v55 = vmax.f32 %v248_v54, 0.0 }
 0x316   :  { %v251_v56 = vadd.f32 1e-05, %v249_v55 }
 0x318   :  { %512 = vrsqrt.f32 %v251_v56 }
 0x322   :  { %v513_v58 = vpop.eup %512 }
 0x323   :  { %v253_v60 = vmul.f32 %v513_v58, %v250_v57 }
 0x325   :  { %v258_v62 = vmul.f32 %v434_v59, %v253_v60 }
 0x327   :  { %v263_v63 = vadd.f32 %v435_v61, %v258_v62 }
 0x329   :  { %v264_v0 = vmax.f32 %v263_v63, 0.0 }
 0x32b   :  { %v265_v1 = vpack.c.bf16 %v264_v0, %v264_v0 }
 0x32d   :  { %492 = vmatmul.mubr.msk.bf16.vlgmr.msra.gmra.mrb[4].mxu1 %vm145_vm1, %v265_v1 }
 0x400   :  { %v323_v3 = vpop.f32.mrb[4].mxu1 }
 0x401   :  { %v324_v4 = vadd.f32 %v436_v2, %v323_v3  ;;  %v493_v5 = vpop.f32.mrb[5].mxu1 }
 0x402   :  { %v326_v6 = vpop.f32.mrb[6].mxu1 }
 0x403   :  { %v494_v7 = vpop.f32.mrb[7].mxu1  ;;  %v330_v8 = vsel %vm329_vm2, %v324_v4, 0.0  ;;  %v335_v9 = vmul.f32 %v324_v4, %v324_v4 }
 0x404   :  { %331 = vadd.xlane.f32.xlu0 %v330_v8 }
 0x405   :  { %v336_v10 = vsel %vm329_vm2, %v335_v9, 0.0 }
 0x406   :  { %337 = vadd.xlane.f32.xlu1 %v336_v10 }
 0x491   :  { %v332_v11 = vpop.xlane.xlu0 %331 }
 0x492   :  { %v334_v12 = vmul.f32 0.0625, %v332_v11 }
 0x493   :  { %v338_v13 = vpop.xlane.xlu1 %337 }
 0x494   :  { %v340_v14 = vmul.f32 %v334_v12, %v334_v12  ;;  %v339_v15 = vmul.f32 0.0625, %v338_v13  ;;  %v343_v19 = vsub.f32 %v324_v4, %v334_v12 }
 0x496   :  { %v341_v16 = vsub.f32 %v339_v15, %v340_v14 }
 0x498   :  { %v342_v17 = vmax.f32 %v341_v16, 0.0 }
 0x49a   :  { %v344_v18 = vadd.f32 1e-05, %v342_v17 }
 0x49c   :  { %514 = vrsqrt.f32 %v344_v18 }
 0x4a6   :  { %v515_v20 = vpop.eup %514 }
 0x4a7   :  { %v346_v22 = vmul.f32 %v515_v20, %v343_v19 }
 0x4a9   :  { %v351_v24 = vmul.f32 %v440_v21, %v346_v22 }
 0x4ab   :  { %v356_v25 = vadd.f32 %v441_v23, %v351_v24 }
 0x4ad   :  { %v357_v27 = vmax.f32 %v356_v25, 0.0 }
 0x4af   :  { %v362_v28 = vmul.f32 %v442_v26, %v357_v27 }
 0x4b1   :  { %v363_v29 = vsel %vm329_vm2, %v362_v28, 0.0 }
 0x4b2   :  { %364 = vadd.xlane.f32.xlu0 %v363_v29 }
 0x53f   :  { %v365_v31 = vpop.xlane.xlu0 %364 }
 0x540   :  { %v370_v32 = vadd.f32 %v443_v30, %v365_v31 }
 0x542   :  { %371 = vxpose.xlu1.b32.start.end [1/1] (short) (narrow) %v370_v32, 8 }
 0x5c2   :  { %v387_v33 = vpop.trf.xlu1 }
 0x5c3   :  { %404 = vst.msk [vmem:[#allocation2] sm:$0x1] %vm403_vm3, %v387_v33 }
 0x5c4   :  { %527 = shalt.err (!%p524_p4)
}
 0x5c5   :  { %s528_s5 = scalar_lea.hbm %s695_s6, 16 }
 0x5c6   :  { %p529_p5 = scmp.ne.s32.totalorder %s695_s6, %s528_s5  ;;  %p532_p6 = scmp.lt.u32.totalorder %s528_s5, %s695_s6 }
 0x5c8   :  { %p534_p7 = pnand %p532_p6, %p529_p5 }
 0x5ca   :  { %537 = shalt.err (!%p534_p7)
}
 0x5cb   :  { %414 = dma.vmem_to_hbm [thread:$0]  %s412_s1, 16, %s695_s6, [#allocation3]  }
 0x5cc   :  { %538 = dma.done.wait [#allocation3], 16  }
 0x5cd   :  { %539 = vsyncadd [#allocation3], 4294967280 }
 0x5ce   :  { %418 = vsyncpa [#allocation3], 1 }

// kernel: tpu_custom_call.1
= control target key start
LH: loop header
LB: loop body
LE: loop exit
PB: predicated region body
PF: predicated region fallthrough
CT: control target
= control target key end

     0   :  { %v540_v1 = vmov 0.0   ;;  %vm541_vm0 = vmmov 0   ;;  %s689_s0 = inlined_call_operand.vmem [shape: bf16[8,128], index: 0, kind: input, shape index: {}]   ;;  %s690_s1 = inlined_call_operand.vmem [shape: bf16[128,32], index: 1, kind: input, shape index: {}]   ;;  %s691_s2 = inlined_call_operand.vmem [shape: bf16[32,32], index: 2, kind: input, shape index: {}]   ;;  %s692_s3 = inlined_call_operand.vmem [shape: bf16[32,16], index: 3, kind: input, shape index: {}]   ;;  %s693_s4 = inlined_call_operand.vmem [shape: f32[8,32], index: 4, kind: input, shape index: {}]   ;;  %s694_s5 = inlined_call_operand.vmem [shape: f32[8,16], index: 5, kind: input, shape index: {}]   ;;  %s695_s6 = inlined_call_operand.hbm [shape: f32[1,1,8], index: 6, kind: output, shape index: {}]  }
   0x1   :  { %v498_v0 = vld [vmem:[%s690_s1] sm:$0xff]   ;;  %459 = vmatprep.subr.bf16.mxu0 %v540_v1  ;;  %479 = vmatprep.subr.bf16.mxu1 %v540_v1  ;;  %v499_v2 = vld [vmem:[%s690_s1 + $0x8] sm:$0xff]   ;;  %v500_v3 = vld [vmem:[%s690_s1 + $0x10] sm:$0xff]  }
   0x2   :  { %460 = vmatpush3.bf16.msra.mxu0 %v498_v0  ;;  %475 = vmatprep.mubr.msk.bf16.mxu0 %vm541_vm0, %v540_v1  ;;  %v501_v4 = vld [vmem:[%s690_s1 + $0x18] sm:$0xff]  }
   0x3   :  { %461 = vmatprep.subr.bf16.mxu0 %v540_v1  ;;  %483 = vmatprep.mubr.msk.bf16.mxu1 %vm541_vm0, %v540_v1 }
   0x6   :  { %462 = vmatpush3.bf16.msra.mxu0 %v499_v2 }
   0x7   :  { %463 = vmatprep.subr.bf16.mxu0 %v540_v1 }
   0xa   :  { %464 = vmatpush3.bf16.msra.mxu0 %v500_v3 }
   0xb   :  { %465 = vmatprep.subr.bf16.mxu0 %v540_v1 }
   0xc   :  { %11 = vsyncpa [#allocation3], 0  ;;  %v502_v5 = vld [vmem:[%s690_s1 + $0x20] sm:$0xff]   ;;  %v503_v6 = vld [vmem:[%s690_s1 + $0x28] sm:$0xff]   ;;  %vm145_vm1 = vcmask 261120   ;;  %vm329_vm2 = vcmask 130048  }
   0xd   :  { %v504_v7 = vld [vmem:[%s690_s1 + $0x30] sm:$0xff]   ;;  %v505_v8 = vld [vmem:[%s690_s1 + $0x38] sm:$0xff]   ;;  %v36_v9 = vld [vmem:[%s689_s0] sm:$0xf]  ;;  %s542_s16 = smov [#allocation2]   ;;  %vm403_vm3 = vcmask 57344  }
   0xe   :  { %466 = vmatpush3.bf16.msra.mxu0 %v501_v4  ;;  %v419_v10 = vld [vmem:[%s693_s4] ss:$0 sm:$0xff]  ;;  %v507_v20 = vld [vmem:[%s691_s2 + $0x8] sm:$0xff]   ;;  %v428_v31 = vld [vmem:[%s693_s4 + $0x1] ss:$0 sm:$0xff]  ;;  %s411_s1 = sshll.u32 %s542_s16, 4  ;;  %s412_s1 = int_to_ptr.vmem [resolvable:$true] %s411_s1 }
   0xf   :  { %467 = vmatprep.subr.bf16.mxu0 %v540_v1  ;;  %v506_v19 = vld [vmem:[%s691_s2] sm:$0xff]   ;;  %v509_v48 = vld [vmem:[%s692_s3 + $0x8] sm:$0xff]   ;;  %s516_s0 = scalar_lea.vmem %s412_s1, 16  ;;  %s520_s17 = scalar_lea.vmem %s412_s1, 32 }
  0x10   :  { %480 = vmatpush3.bf16.msra.mxu1 %v506_v19  ;;  %v429_v33 = vld [vmem:[%s693_s4 + $0x2] ss:$0 sm:$0xff]  ;;  %v430_v38 = vld [vmem:[%s693_s4 + $0x3] ss:$0 sm:$0xff]  ;;  %v434_v59 = vld [vmem:[%s693_s4 + $0x4] ss:$0 sm:$0xff]  ;;  %p517_p0 = scmp.ne.s32.totalorder %s412_s1, %s516_s0  ;;  %p521_p1 = scmp.lt.s32.totalorder %s412_s1, %s412_s1 }
  0x11   :  { %481 = vmatprep.subr.bf16.mxu1 %v540_v1  ;;  %v508_v47 = vld [vmem:[%s692_s3] sm:$0xff]   ;;  %p522_p2 = scmp.lt.s32.totalorder %s520_s17, %s516_s0 }
  0x12   :  { %468 = vmatpush3.bf16.msra.mxu0 %v502_v5  ;;  %v435_v61 = vld [vmem:[%s693_s4 + $0x5] ss:$0 sm:$0xff]  ;;  %v436_v2 = vld [vmem:[%s694_s5] ss:$0 sm:$0xff] }
  0x13   :  { %469 = vmatprep.subr.bf16.mxu0 %v540_v1  ;;  %p523_p3 = por %p522_p2, %p521_p1 }
  0x14   :  { %482 = vmatpush3.bf16.msra.mxu1 %v507_v20 }
  0x15   :  { %487 = vmatprep.subr.bf16.mxu1 %v540_v1  ;;  %p524_p4 = pnand %p523_p3, %p517_p0 }
  0x16   :  { %470 = vmatpush3.bf16.msra.mxu0 %v503_v6 }
  0x17   :  { %471 = vmatprep.subr.bf16.mxu0 %v540_v1 }
  0x1a   :  { %472 = vmatpush3.bf16.msra.mxu0 %v504_v7 }
  0x1b   :  { %473 = vmatprep.subr.bf16.mxu0 %v540_v1 }
  0x1e   :  { %474 = vmatpush3.bf16.msra.mxu0 %v505_v8 }
  0x21   :  { %476 = vmatmul.mubr.bf16.vlgmr.msra.gmra.mrb[0].mxu0 %v36_v9 }
  0xf4   :  { %v139_v11 = vpop.f32.mrb[0].mxu0 }
  0xf5   :  { %v140_v12 = vadd.f32 %v419_v10, %v139_v11  ;;  %v477_v13 = vpop.f32.mrb[1].mxu0 }
  0xf6   :  { %v142_v14 = vpop.f32.mrb[2].mxu0 }
  0xf7   :  { %v478_v15 = vpop.f32.mrb[3].mxu0  ;;  %v146_v16 = vsel %vm145_vm1, %v140_v12, 0.0  ;;  %v151_v17 = vmul.f32 %v140_v12, %v140_v12 }
  0xf8   :  { %147 = vadd.xlane.f32.xlu0 %v146_v16 }
  0xf9   :  { %v152_v18 = vsel %vm145_vm1, %v151_v17, 0.0 }
  0xfc   :  { %153 = vadd.xlane.f32.xlu0 %v152_v18 }
 0x185   :  { %v148_v21 = vpop.xlane.xlu0 %147 }
 0x186   :  { %v150_v22 = vmul.f32 0.03125, %v148_v21  ;;  %v440_v21 = vld [vmem:[%s694_s5 + $0x1] ss:$0 sm:$0xff] }
 0x188   :  { %v156_v24 = vmul.f32 %v150_v22, %v150_v22  ;;  %v159_v29 = vsub.f32 %v140_v12, %v150_v22 }
 0x189   :  { %v154_v23 = vpop.xlane.xlu0 %153 }
 0x18a   :  { %v155_v25 = vmul.f32 0.03125, %v154_v23  ;;  %v441_v23 = vld [vmem:[%s694_s5 + $0x2] ss:$0 sm:$0xff] }
 0x18c   :  { %v157_v26 = vsub.f32 %v155_v25, %v156_v24 }
 0x18e   :  { %v158_v27 = vmax.f32 %v157_v26, 0.0  ;;  %v442_v26 = vld [vmem:[%s694_s5 + $0x3] ss:$0 sm:$0xff] }
 0x190   :  { %v160_v28 = vadd.f32 1e-05, %v158_v27 }
 0x192   :  { %510 = vrsqrt.f32 %v160_v28 }
 0x19c   :  { %v511_v30 = vpop.eup %510 }
 0x19d   :  { %v162_v32 = vmul.f32 %v511_v30, %v159_v29  ;;  %v443_v30 = vld [vmem:[%s694_s5 + $0x4] ss:$0 sm:$0xff] }
 0x19f   :  { %v167_v34 = vmul.f32 %v428_v31, %v162_v32 }
 0x1a1   :  { %v172_v35 = vadd.f32 %v429_v33, %v167_v34 }
 0x1a3   :  { %v173_v36 = vmax.f32 %v172_v35, 0.0 }
 0x1a5   :  { %v174_v37 = vpack.c.bf16 %v173_v36, %v173_v36 }
 0x1a7   :  { %484 = vmatmul.mubr.msk.bf16.vlgmr.msra.gmra.mrb[0].mxu1 %vm145_vm1, %v174_v37 }
 0x1a8   :  { %491 = vmatprep.mubr.msk.bf16.mxu1 %vm541_vm0, %v540_v1  ;;  %488 = vmatpush3.bf16.msra.mxu1 %v508_v47 }
 0x1a9   :  { %489 = vmatprep.subr.bf16.mxu1 %v540_v1 }
 0x1ac   :  { %490 = vmatpush3.bf16.msra.mxu1 %v509_v48 }
 0x27a   :  { %v232_v39 = vpop.f32.mrb[0].mxu1 }
 0x27b   :  { %v233_v40 = vadd.f32 %v430_v38, %v232_v39  ;;  %v485_v41 = vpop.f32.mrb[1].mxu1 }
 0x27c   :  { %v235_v42 = vpop.f32.mrb[2].mxu1 }
 0x27d   :  { %v486_v43 = vpop.f32.mrb[3].mxu1  ;;  %v238_v44 = vsel %vm145_vm1, %v233_v40, 0.0  ;;  %v242_v45 = vmul.f32 %v233_v40, %v233_v40 }
 0x27e   :  { %239 = vadd.xlane.f32.xlu1 %v238_v44 }
 0x27f   :  { %v243_v46 = vsel %vm145_vm1, %v242_v45, 0.0 }
 0x282   :  { %244 = vadd.xlane.f32.xlu1 %v243_v46 }
 0x30b   :  { %v240_v49 = vpop.xlane.xlu1 %239 }
 0x30c   :  { %v241_v50 = vmul.f32 0.03125, %v240_v49 }
 0x30e   :  { %v247_v52 = vmul.f32 %v241_v50, %v241_v50  ;;  %v250_v57 = vsub.f32 %v233_v40, %v241_v50 }
 0x30f   :  { %v245_v51 = vpop.xlane.xlu1 %244 }
 0x310   :  { %v246_v53 = vmul.f32 0.03125, %v245_v51 }
 0x312   :  { %v248_v54 = vsub.f32 %v246_v53, %v247_v52 }
 0x314   :  { %v249_v55 = vmax.f32 %v248_v54, 0.0 }
 0x316   :  { %v251_v56 = vadd.f32 1e-05, %v249_v55 }
 0x318   :  { %512 = vrsqrt.f32 %v251_v56 }
 0x322   :  { %v513_v58 = vpop.eup %512 }
 0x323   :  { %v253_v60 = vmul.f32 %v513_v58, %v250_v57 }
 0x325   :  { %v258_v62 = vmul.f32 %v434_v59, %v253_v60 }
 0x327   :  { %v263_v63 = vadd.f32 %v435_v61, %v258_v62 }
 0x329   :  { %v264_v0 = vmax.f32 %v263_v63, 0.0 }
 0x32b   :  { %v265_v1 = vpack.c.bf16 %v264_v0, %v264_v0 }
 0x32d   :  { %492 = vmatmul.mubr.msk.bf16.vlgmr.msra.gmra.mrb[4].mxu1 %vm145_vm1, %v265_v1 }
 0x400   :  { %v323_v3 = vpop.f32.mrb[4].mxu1 }
 0x401   :  { %v324_v4 = vadd.f32 %v436_v2, %v323_v3  ;;  %v493_v5 = vpop.f32.mrb[5].mxu1 }
 0x402   :  { %v326_v6 = vpop.f32.mrb[6].mxu1 }
 0x403   :  { %v494_v7 = vpop.f32.mrb[7].mxu1  ;;  %v330_v8 = vsel %vm329_vm2, %v324_v4, 0.0  ;;  %v335_v9 = vmul.f32 %v324_v4, %v324_v4 }
 0x404   :  { %331 = vadd.xlane.f32.xlu0 %v330_v8 }
 0x405   :  { %v336_v10 = vsel %vm329_vm2, %v335_v9, 0.0 }
 0x406   :  { %337 = vadd.xlane.f32.xlu1 %v336_v10 }
 0x491   :  { %v332_v11 = vpop.xlane.xlu0 %331 }
 0x492   :  { %v334_v12 = vmul.f32 0.0625, %v332_v11 }
 0x493   :  { %v338_v13 = vpop.xlane.xlu1 %337 }
 0x494   :  { %v340_v14 = vmul.f32 %v334_v12, %v334_v12  ;;  %v339_v15 = vmul.f32 0.0625, %v338_v13  ;;  %v343_v19 = vsub.f32 %v324_v4, %v334_v12 }
 0x496   :  { %v341_v16 = vsub.f32 %v339_v15, %v340_v14 }
 0x498   :  { %v342_v17 = vmax.f32 %v341_v16, 0.0 }
 0x49a   :  { %v344_v18 = vadd.f32 1e-05, %v342_v17 }
 0x49c   :  { %514 = vrsqrt.f32 %v344_v18 }
 0x4a6   :  { %v515_v20 = vpop.eup %514 }
 0x4a7   :  { %v346_v22 = vmul.f32 %v515_v20, %v343_v19 }
 0x4a9   :  { %v351_v24 = vmul.f32 %v440_v21, %v346_v22 }
 0x4ab   :  { %v356_v25 = vadd.f32 %v441_v23, %v351_v24 }
 0x4ad   :  { %v357_v27 = vmax.f32 %v356_v25, 0.0 }
 0x4af   :  { %v362_v28 = vmul.f32 %v442_v26, %v357_v27 }
 0x4b1   :  { %v363_v29 = vsel %vm329_vm2, %v362_v28, 0.0 }
 0x4b2   :  { %364 = vadd.xlane.f32.xlu0 %v363_v29 }
 0x53f   :  { %v365_v31 = vpop.xlane.xlu0 %364 }
 0x540   :  { %v370_v32 = vadd.f32 %v443_v30, %v365_v31 }
 0x542   :  { %371 = vxpose.xlu1.b32.start.end [1/1] (short) (narrow) %v370_v32, 8 }
 0x5c2   :  { %v387_v33 = vpop.trf.xlu1 }
 0x5c3   :  { %404 = vst.msk [vmem:[#allocation2] sm:$0x1] %vm403_vm3, %v387_v33 }
 0x5c4   :  { %527 = shalt.err (!%p524_p4)
}
 0x5c5   :  { %s528_s5 = scalar_lea.hbm %s695_s6, 16 }
 0x5c6   :  { %p529_p5 = scmp.ne.s32.totalorder %s695_s6, %s528_s5  ;;  %p532_p6 = scmp.lt.u32.totalorder %s528_s5, %s695_s6 }
 0x5c8   :  { %p534_p7 = pnand %p532_p6, %p529_p5 }
 0x5ca   :  { %537 = shalt.err (!%p534_p7)
}
 0x5cb   :  { %414 = dma.vmem_to_hbm [thread:$0]  %s412_s1, 16, %s695_s6, [#allocation3]  }
 0x5cc   :  { %538 = dma.done.wait [#allocation3], 16  }
 0x5cd   :  { %539 = vsyncadd [#allocation3], 4294967280 }
 0x5ce   :  { %418 = vsyncpa [#allocation3], 1 }

</bundles_post_ra>
